<compile_context>
chip_gen: v6e
topology: v6e:2x2x1
jax: 0.10.0
libtpu: 0.0.40
codegen_flags: <defaults>
</compile_context>

<pallas_src>
import jax
import jax.numpy as jnp
from jax.experimental import pallas as pl
from jax.experimental.pallas import tpu as pltpu


# ----------------------------------------------------------------------------
# Kernel: dense 4-D blocks, all (8,128)-tile aligned.
#   off/start/out blocks: (f, 3, Rb, 128);  scale block: (f, 1, Rb, 128)
# ----------------------------------------------------------------------------
def _dense_kernel(off_ref, start_ref, scale_ref, out_ref):
    off = jnp.tanh(off_ref[...])                              # (f,3,Rb,128)
    # Channel "reduction" over the leading axis=1: plain VPU adds across
    # three dense (Rb,128) vreg sets -- no XLU reduce, no sublane broadcast.
    nsq = jnp.sum(off * off, axis=1, keepdims=True)           # (f,1,Rb,128)
    # torch.nan_to_num(off / ||off||): ||off|| == 0 only when off == 0 -> 0.
    # (Divergence only if ||tanh(off)||^2 underflows to 0 with off != 0.)
    # The nsq > 0 gate also makes edge-block / padded garbage rows harmless.
    inv = jnp.where(nsq > 0.0, jax.lax.rsqrt(nsq), 0.0)
    s = inv * scale_ref[...]                                  # fold once, reuse 3x
    out_ref[...] = start_ref[...] + off * s


# ----------------------------------------------------------------------------
# Best-effort hardware detection (safe defaults if anything is unavailable).
# ----------------------------------------------------------------------------
def _hw_params():
    num_tc = 1
    vmem_limit = 32 * 1024 * 1024
    try:
        kind = jax.devices()[0].device_kind.lower()
        if "v7" in kind:
            num_tc = 2                        # v7x: 2 TensorCores per chip
            vmem_limit = 32 * 1024 * 1024     # 64 MiB physical -> keep headroom
        else:
            vmem_limit = 64 * 1024 * 1024     # v5e/v6e: 128 MiB physical
    except Exception:
        pass
    try:
        info = pltpu.get_tpu_info()
        cap = int(getattr(info, "vmem_capacity_bytes", 0) or 0)
        if cap:
            vmem_limit = min(vmem_limit, max(cap // 2, 16 * 1024 * 1024))
        num_tc = int(getattr(info, "num_tensorcores", num_tc) or num_tc)
    except Exception:
        pass
    return num_tc, vmem_limit


# ----------------------------------------------------------------------------
# Forward pass wrapper
# ----------------------------------------------------------------------------
def layer_forward(offsets, start, scales):
    """offsets: (6,3,n,n), start: (6,3,n,n), scales: (6,1,n,n) -> (6,3,n,n)."""
    f, c, n, _ = offsets.shape
    p = n * n

    num_tc, vmem_limit = _hw_params()

    # Dense layout (f, c, R, 128): contiguous reshape when p % 128 == 0,
    # otherwise pad the flattened spatial axis once (zeros -> gated to 0).
    p_pad = ((p + 127) // 128) * 128
    off3 = offsets.reshape(f, c, p)
    st3 = start.reshape(f, c, p)
    sc3 = scales.reshape(f, 1, p)
    if p_pad != p:
        padw = ((0, 0), (0, 0), (0, p_pad - p))
        off3 = jnp.pad(off3, padw)
        st3 = jnp.pad(st3, padw)
        sc3 = jnp.pad(sc3, padw)
    r = p_pad // 128
    off4 = off3.reshape(f, c, r, 128)
    st4 = st3.reshape(f, c, r, 128)
    sc4 = sc3.reshape(f, 1, r, 128)

    # Row-block size over the R axis. Rb=256 -> ~7.9 MiB per set of blocks
    # (~15.7 MiB double-buffered); Rb=512 when the VMEM budget allows.
    rb_max = 512 if vmem_limit >= 48 * 1024 * 1024 else 256
    if r <= rb_max:
        rb, nblk = r, 1                        # single block (block == full dim)
    else:
        rb = rb_max
        nblk = pl.cdiv(r, rb)
        # Balance across TensorCores only when there is more than one (v7x).
        if num_tc > 1 and nblk % num_tc != 0:
            nblk_even = pl.cdiv(nblk, num_tc) * num_tc
            rb_even = ((pl.cdiv(r, nblk_even) + 7) // 8) * 8
            nblk_chk = pl.cdiv(r, rb_even)
            if nblk_chk % num_tc == 0:         # re-check; fix-up can fail for huge r
                rb, nblk = rb_even, nblk_chk

    out4 = pl.pallas_call(
        _dense_kernel,
        out_shape=jax.ShapeDtypeStruct((f, c, r, 128), jnp.float32),
        grid=(nblk,),
        in_specs=[
            pl.BlockSpec((f, c, rb, 128), lambda i: (0, 0, i, 0)),
            pl.BlockSpec((f, c, rb, 128), lambda i: (0, 0, i, 0)),
            pl.BlockSpec((f, 1, rb, 128), lambda i: (0, 0, i, 0)),
        ],
        out_specs=pl.BlockSpec((f, c, rb, 128), lambda i: (0, 0, i, 0)),
        compiler_params=pltpu.CompilerParams(
            dimension_semantics=("parallel",),
            vmem_limit_bytes=vmem_limit,
        ),
    )(off4, st4, sc4)

    out = out4.reshape(f, c, p_pad)
    if p_pad != p:
        out = out[:, :, :p]
    return out.reshape(f, c, n, n)


# ----------------------------------------------------------------------------
# Init-time glue (plain JAX): bilinear upsample + kNN scales
# ----------------------------------------------------------------------------
def bilinear_align_corners(x, n):
    """F.interpolate(x, n, mode='bilinear', align_corners=True); x: (B,C,H,W)."""
    _, _, h, w = x.shape
    ys = jnp.linspace(0.0, h - 1.0, n) if n > 1 else jnp.zeros((1,))
    xs = jnp.linspace(0.0, w - 1.0, n) if n > 1 else jnp.zeros((1,))
    y0 = jnp.floor(ys).astype(jnp.int32)
    x0 = jnp.floor(xs).astype(jnp.int32)
    y1 = jnp.clip(y0 + 1, 0, h - 1)
    x1 = jnp.clip(x0 + 1, 0, w - 1)
    fy = (ys - y0)[None, None, :, None]
    fx = (xs - x0)[None, None, None, :]
    v00 = x[:, :, y0, :][:, :, :, x0]
    v01 = x[:, :, y0, :][:, :, :, x1]
    v10 = x[:, :, y1, :][:, :, :, x0]
    v11 = x[:, :, y1, :][:, :, :, x1]
    top = (1.0 - fx) * v00 + fx * v01
    bot = (1.0 - fx) * v10 + fx * v11
    return (1.0 - fy) * top + fy * bot


def get_scales(vertices, ratio):
    """pytorch3d knn_points(pts, pts, K=2).dists[:, :, 1] * ratio (squared dists)."""
    f, _, n, _ = vertices.shape
    pts = jnp.transpose(vertices, (0, 2, 3, 1)).reshape(-1, 3)       # (N, 3)
    d2 = jnp.sum((pts[:, None, :] - pts[None, :, :]) ** 2, axis=-1)  # (N, N)
    second = jnp.sort(d2, axis=-1)[:, 1]                             # skip self (0)
    return second.reshape(f, 1, n, n) * ratio


# TODO(synk): make_cube_faces()/faces buffer is not used in forward(); omitted.
# TODO(synk): get_scales builds a dense NxN distance matrix (init-time only);
#             infeasible for very large n, but not part of the Pallas kernel.


if __name__ == "__main__":
    n = 16
    coarse_res = 4
    ratio = 0.5

    key = jax.random.PRNGKey(0)
    k_coarse, k_off = jax.random.split(key)

    # coarse cube-face grid, NCHW: (6 faces, 3 coords, coarse_res, coarse_res)
    coarse = jax.random.normal(k_coarse, (6, 3, coarse_res, coarse_res),
                               dtype=jnp.float32)
    # nn.Parameter(torch.randn(6, 3, n, n)) -> deterministic normal init
    offsets = jax.random.normal(k_off, (6, 3, n, n), dtype=jnp.float32)

    start = bilinear_align_corners(coarse, n)          # buffer 'start'
    scales = get_scales(start, ratio)                  # buffer 'scales'

    out = jax.jit(layer_forward)(offsets, start, scales)
    out = jax.block_until_ready(out)

    # correctness check vs pure-JAX reference of the same math
    off_t = jnp.tanh(offsets)
    norm = jnp.sqrt(jnp.sum(off_t * off_t, axis=1, keepdims=True))
    normed = jnp.where(norm > 0.0, off_t / norm, 0.0)
    ref = start + normed * scales
    assert out.shape == (6, 3, n, n)
    assert jnp.max(jnp.abs(out - ref)) < 1e-5

    print("KERNEL_OK")
</pallas_src>

<mosaic_0001>
module attributes {stable_mosaic.version = 11 : i64} {
  func.func @_dense_kernel(%arg0: i32, %arg1: memref<6x3x2x128xf32, #tpu.memory_space<vmem>>, %arg2: memref<6x3x2x128xf32, #tpu.memory_space<vmem>>, %arg3: memref<6x1x2x128xf32, #tpu.memory_space<vmem>>, %arg4: memref<6x3x2x128xf32, #tpu.memory_space<vmem>>) attributes {dimension_semantics = [#tpu.dimension_semantics<parallel>], iteration_bounds = array<i64: 1>, scalar_prefetch = 0 : i64, scratch_operands = 0 : i64, tpu.core_type = #tpu.core_type<tc>, window_params = [{transform_indices = @transform_0, window_bounds = array<i64: 6, 3, 2, 128>}, {transform_indices = @transform_1, window_bounds = array<i64: 6, 3, 2, 128>}, {transform_indices = @transform_2, window_bounds = array<i64: 6, 1, 2, 128>}, {transform_indices = @transform_3, window_bounds = array<i64: 6, 3, 2, 128>}]} {
    %c0 = arith.constant 0 : index
    %c0_0 = arith.constant 0 : index
    %c0_1 = arith.constant 0 : index
    %c0_2 = arith.constant 0 : index
    %0 = vector.load %arg1[%c0, %c0_0, %c0_1, %c0_2] : memref<6x3x2x128xf32, #tpu.memory_space<vmem>>, vector<6x3x2x128xf32>
    %1 = math.tanh %0 : vector<6x3x2x128xf32>
    %2 = arith.mulf %1, %1 : vector<6x3x2x128xf32>
    %cst = arith.constant dense<0.000000e+00> : vector<6x2x128xf32>
    %3 = vector.multi_reduction <add>, %2, %cst [1] : vector<6x3x2x128xf32> to vector<6x2x128xf32>
    %4 = vector.shape_cast %3 : vector<6x2x128xf32> to vector<6x1x2x128xf32>
    %cst_3 = arith.constant 0.000000e+00 : f32
    %5 = vector.broadcast %cst_3 : f32 to vector<6x1x2x128xf32>
    %6 = arith.cmpf ogt, %4, %5 : vector<6x1x2x128xf32>
    %7 = math.rsqrt %4 : vector<6x1x2x128xf32>
    %cst_4 = arith.constant 0.000000e+00 : f32
    %8 = vector.broadcast %cst_4 : f32 to vector<6x1x2x128xf32>
    %9 = arith.select %6, %7, %8 : vector<6x1x2x128xi1>, vector<6x1x2x128xf32>
    %c0_5 = arith.constant 0 : index
    %c0_6 = arith.constant 0 : index
    %c0_7 = arith.constant 0 : index
    %c0_8 = arith.constant 0 : index
    %10 = vector.load %arg3[%c0_5, %c0_6, %c0_7, %c0_8] : memref<6x1x2x128xf32, #tpu.memory_space<vmem>>, vector<6x1x2x128xf32>
    %11 = arith.mulf %9, %10 : vector<6x1x2x128xf32>
    %c0_9 = arith.constant 0 : index
    %c0_10 = arith.constant 0 : index
    %c0_11 = arith.constant 0 : index
    %c0_12 = arith.constant 0 : index
    %12 = vector.load %arg2[%c0_9, %c0_10, %c0_11, %c0_12] : memref<6x3x2x128xf32, #tpu.memory_space<vmem>>, vector<6x3x2x128xf32>
    %13 = vector.broadcast %11 : vector<6x1x2x128xf32> to vector<6x3x2x128xf32>
    %14 = arith.mulf %1, %13 : vector<6x3x2x128xf32>
    %15 = arith.addf %12, %14 : vector<6x3x2x128xf32>
    %c0_13 = arith.constant 0 : index
    %c0_14 = arith.constant 0 : index
    %c0_15 = arith.constant 0 : index
    %c0_16 = arith.constant 0 : index
    %16 = vector.load %arg4[%c0_13, %c0_14, %c0_15, %c0_16] : memref<6x3x2x128xf32, #tpu.memory_space<vmem>>, vector<6x3x2x128xf32>
    tpu.vector_store %arg4[%c0_13, %c0_14, %c0_15, %c0_16], %15 {strides = array<i32>} : memref<6x3x2x128xf32, #tpu.memory_space<vmem>>, vector<6x3x2x128xf32>,
    return
  }
  func.func @transform_0(%arg0: i32) -> (i32, i32, i32, i32) {
    %c0_i32 = arith.constant 0 : i32
    %c0_i32_0 = arith.constant 0 : i32
    %c0_i32_1 = arith.constant 0 : i32
    %c0_i32_2 = arith.constant 0 : i32
    return %c0_i32, %c0_i32_0, %arg0, %c0_i32_1 : i32, i32, i32, i32
  }
  func.func @transform_1(%arg0: i32) -> (i32, i32, i32, i32) {
    %c0_i32 = arith.constant 0 : i32
    %c0_i32_0 = arith.constant 0 : i32
    %c0_i32_1 = arith.constant 0 : i32
    %c0_i32_2 = arith.constant 0 : i32
    return %c0_i32, %c0_i32_0, %arg0, %c0_i32_1 : i32, i32, i32, i32
  }
  func.func @transform_2(%arg0: i32) -> (i32, i32, i32, i32) {
    %c0_i32 = arith.constant 0 : i32
    %c0_i32_0 = arith.constant 0 : i32
    %c0_i32_1 = arith.constant 0 : i32
    %c0_i32_2 = arith.constant 0 : i32
    return %c0_i32, %c0_i32_0, %arg0, %c0_i32_1 : i32, i32, i32, i32
  }
  func.func @transform_3(%arg0: i32) -> (i32, i32, i32, i32) {
    %c0_i32 = arith.constant 0 : i32
    %c0_i32_0 = arith.constant 0 : i32
    %c0_i32_1 = arith.constant 0 : i32
    %c0_i32_2 = arith.constant 0 : i32
    return %c0_i32, %c0_i32_0, %arg0, %c0_i32_1 : i32, i32, i32, i32
  }
}

</mosaic_0001>

<bundles_post_ra>
// kernel: layer_forward.1
= control target key start
LH: loop header
LB: loop body
LE: loop exit
PB: predicated region body
PF: predicated region fallthrough
CT: control target
= control target key end

     0   :  { %vm68_vm0 = vcmask 1041408   ;;  %s580_s0 = inlined_call_operand.vmem [shape: f32[6,3,2,128], index: 0, kind: input, shape index: {}]   ;;  %s581_s2 = inlined_call_operand.vmem [shape: f32[6,1,2,128], index: 2, kind: input, shape index: {}]   ;;  %s582_s1 = inlined_call_operand.vmem [shape: f32[6,3,2,128], index: 1, kind: input, shape index: {}]   ;;  %s583_s3 = inlined_call_operand.vmem [shape: f32[6,3,2,128], index: 3, kind: output, shape index: {}]  }
   0x1   :  { %v14_v0 = vld [vmem:[%s580_s0] sm:$0x3]  ;;  %v15_v1 = vld [vmem:[%s580_s0 + $0x2] sm:$0x3]  ;;  %v16_v2 = vld [vmem:[%s580_s0 + $0x4] sm:$0x3] }
   0x2   :  { %205 = vtanh.f32 %v14_v0  ;;  %v17_v3 = vld [vmem:[%s580_s0 + $0x6] sm:$0x3]  ;;  %v18_v4 = vld [vmem:[%s580_s0 + $0x8] sm:$0x3]  ;;  %v19_v5 = vld [vmem:[%s580_s0 + $0xa] sm:$0x3] }
   0x3   :  { %207 = vtanh.f32 %v15_v1  ;;  %v20_v6 = vld [vmem:[%s580_s0 + $0xc] sm:$0x3]  ;;  %v21_v7 = vld [vmem:[%s580_s0 + $0xe] sm:$0x3]  ;;  %v22_v8 = vld [vmem:[%s580_s0 + $0x10] sm:$0x3] }
   0x4   :  { %209 = vtanh.f32 %v16_v2  ;;  %v23_v9 = vld [vmem:[%s580_s0 + $0x12] sm:$0x3]  ;;  %v24_v10 = vld [vmem:[%s580_s0 + $0x14] sm:$0x3]  ;;  %v25_v11 = vld [vmem:[%s580_s0 + $0x16] sm:$0x3] }
   0x5   :  { %211 = vtanh.f32 %v17_v3  ;;  %v26_v12 = vld [vmem:[%s580_s0 + $0x18] sm:$0x3]  ;;  %v27_v13 = vld [vmem:[%s580_s0 + $0x1a] sm:$0x3]  ;;  %v28_v14 = vld [vmem:[%s580_s0 + $0x1c] sm:$0x3] }
   0x6   :  { %213 = vtanh.f32 %v18_v4  ;;  %v29_v15 = vld [vmem:[%s580_s0 + $0x1e] sm:$0x3]  ;;  %v30_v17 = vld [vmem:[%s580_s0 + $0x20] sm:$0x3]  ;;  %v31_v20 = vld [vmem:[%s580_s0 + $0x22] sm:$0x3] }
   0x7   :  { %215 = vtanh.f32 %v19_v5 }
   0x8   :  { %217 = vtanh.f32 %v20_v6 }
   0x9   :  { %219 = vtanh.f32 %v21_v7 }
   0xa   :  { %221 = vtanh.f32 %v22_v8 }
   0xb   :  { %223 = vtanh.f32 %v23_v9 }
   0xc   :  { %225 = vtanh.f32 %v24_v10 }
   0xd   :  { %227 = vtanh.f32 %v25_v11 }
   0xe   :  { %229 = vtanh.f32 %v26_v12 }
   0xf   :  { %v321_v16 = vpop.eup %205  ;;  %231 = vtanh.f32 %v27_v13 }
  0x10   :  { %v326_v18 = vpop.eup %207  ;;  %v50_v19 = vmul.f32 %v321_v16, %v321_v16  ;;  %233 = vtanh.f32 %v28_v14 }
  0x11   :  { %v333_v21 = vpop.eup %209  ;;  %v51_v22 = vmul.f32 %v326_v18, %v326_v18  ;;  %235 = vtanh.f32 %v29_v15 }
  0x12   :  { %v337_v23 = vpop.eup %211  ;;  %v52_v24 = vmul.f32 %v333_v21, %v333_v21  ;;  %v69_v25 = vsel %vm68_vm0, %v50_v19, 0.0  ;;  %237 = vtanh.f32 %v30_v17 }
  0x13   :  { %v342_v26 = vpop.eup %213  ;;  %v70_v27 = vsel %vm68_vm0, %v51_v22, 0.0  ;;  %v53_v28 = vmul.f32 %v337_v23, %v337_v23  ;;  %239 = vtanh.f32 %v31_v20  ;;  %v117_v22 = vld [vmem:[%s581_s2] sm:$0x3] }
  0x14   :  { %v347_v29 = vpop.eup %215  ;;  %v71_v30 = vadd.f32 %v70_v27, %v69_v25  ;;  %v72_v31 = vsel %vm68_vm0, %v52_v24, 0.0  ;;  %v54_v32 = vmul.f32 %v342_v26, %v342_v26 }
  0x15   :  { %v352_v33 = vpop.eup %217  ;;  %v55_v34 = vmul.f32 %v347_v29, %v347_v29  ;;  %v74_v35 = vsel %vm68_vm0, %v53_v28, 0.0 }
  0x16   :  { %v357_v36 = vpop.eup %219  ;;  %v73_v37 = vadd.f32 %v72_v31, %v71_v30  ;;  %v75_v38 = vsel %vm68_vm0, %v54_v32, 0.0  ;;  %v56_v39 = vmul.f32 %v352_v33, %v352_v33  ;;  %v129_v30 = vld [vmem:[%s582_s1] sm:$0x3]  ;;  %v118_v31 = vld [vmem:[%s581_s2 + $0x2] sm:$0x3] }
  0x17   :  { %v362_v40 = vpop.eup %221  ;;  %v76_v41 = vadd.f32 %v75_v38, %v74_v35  ;;  %v77_v42 = vsel %vm68_vm0, %v55_v34, 0.0  ;;  %v57_v43 = vmul.f32 %v357_v36, %v357_v36  ;;  %v130_v34 = vld [vmem:[%s582_s1 + $0x2] sm:$0x3]  ;;  %v131_v35 = vld [vmem:[%s582_s1 + $0x4] sm:$0x3] }
  0x18   :  { %v367_v44 = vpop.eup %223  ;;  %241 = vrsqrt.f32 %v73_v37  ;;  %v58_v45 = vmul.f32 %v362_v40, %v362_v40  ;;  %v79_v46 = vsel %vm68_vm0, %v56_v39, 0.0  ;;  %vm99_vm1 = vcmp.gt.f32.partialorder %v73_v37, 0.0 }
  0x19   :  { %v372_v47 = vpop.eup %225  ;;  %v78_v48 = vadd.f32 %v77_v42, %v76_v41  ;;  %v80_v49 = vsel %vm68_vm0, %v57_v43, 0.0  ;;  %v59_v50 = vmul.f32 %v367_v44, %v367_v44  ;;  %v132_v43 = vld [vmem:[%s582_s1 + $0x6] sm:$0x3] }
  0x1a   :  { %v377_v51 = vpop.eup %227  ;;  %v81_v52 = vadd.f32 %v80_v49, %v79_v46  ;;  %v82_v53 = vsel %vm68_vm0, %v58_v45, 0.0  ;;  %v60_v54 = vmul.f32 %v372_v47, %v372_v47  ;;  %v119_v45 = vld [vmem:[%s581_s2 + $0x4] sm:$0x3] }
  0x1b   :  { %v382_v55 = vpop.eup %229  ;;  %243 = vrsqrt.f32 %v78_v48  ;;  %v61_v56 = vmul.f32 %v377_v51, %v377_v51  ;;  %v84_v57 = vsel %vm68_vm0, %v59_v50, 0.0  ;;  %vm100_vm2 = vcmp.gt.f32.partialorder %v78_v48, 0.0 }
  0x1c   :  { %v387_v58 = vpop.eup %231  ;;  %v83_v59 = vadd.f32 %v82_v53, %v81_v52  ;;  %v85_v60 = vsel %vm68_vm0, %v60_v54, 0.0  ;;  %v62_v61 = vmul.f32 %v382_v55, %v382_v55 }
  0x1d   :  { %v392_v62 = vpop.eup %233  ;;  %v86_v63 = vadd.f32 %v85_v60, %v84_v57  ;;  %v87_v0 = vsel %vm68_vm0, %v61_v56, 0.0  ;;  %v63_v1 = vmul.f32 %v387_v58, %v387_v58 }
  0x1e   :  { %v397_v2 = vpop.eup %235  ;;  %245 = vrsqrt.f32 %v83_v59  ;;  %v64_v3 = vmul.f32 %v392_v62, %v392_v62  ;;  %v89_v4 = vsel %vm68_vm0, %v62_v61, 0.0  ;;  %vm101_vm3 = vcmp.gt.f32.partialorder %v83_v59, 0.0  ;;  %v136_v61 = vld [vmem:[%s582_s1 + $0xe] sm:$0x3] }
  0x1f   :  { %v402_v5 = vpop.eup %237  ;;  %v404_v6 = vadd.f32 %v87_v0, %v86_v63  ;;  %v90_v7 = vsel %vm68_vm0, %v63_v1, 0.0  ;;  %v65_v8 = vmul.f32 %v397_v2, %v397_v2  ;;  %v137_v63 = vld [vmem:[%s582_s1 + $0x10] sm:$0x3] }
  0x20   :  { %v409_v9 = vpop.eup %239  ;;  %v91_v10 = vadd.f32 %v90_v7, %v89_v4  ;;  %v92_v11 = vsel %vm68_vm0, %v64_v3, 0.0  ;;  %v66_v12 = vmul.f32 %v402_v5, %v402_v5 }
  0x21   :  { %247 = vrsqrt.f32 %v404_v6  ;;  %v67_v13 = vmul.f32 %v409_v9, %v409_v9  ;;  %v94_v14 = vsel %vm68_vm0, %v65_v8, 0.0  ;;  %vm102_vm4 = vcmp.gt.f32.partialorder %v404_v6, 0.0 }
  0x22   :  { %v418_v15 = vadd.f32 %v92_v11, %v91_v10  ;;  %v95_v17 = vsel %vm68_vm0, %v66_v12, 0.0  ;;  %v139_v11 = vld [vmem:[%s582_s1 + $0x14] sm:$0x3]  ;;  %v140_v12 = vld [vmem:[%s582_s1 + $0x16] sm:$0x3] }
  0x23   :  { %v96_v19 = vadd.f32 %v95_v17, %v94_v14  ;;  %v97_v20 = vsel %vm68_vm0, %v67_v13, 0.0 }
  0x24   :  { %249 = vrsqrt.f32 %v418_v15  ;;  %vm103_vm5 = vcmp.gt.f32.partialorder %v418_v15, 0.0 }
  0x25   :  { %v242_v24 = vpop.eup %241  ;;  %v426_v25 = vadd.f32 %v97_v20, %v96_v19 }
  0x26   :  { %v111_v27 = vsel %vm99_vm1, %v242_v24, 0.0  ;;  %v141_v24 = vld [vmem:[%s582_s1 + $0x18] sm:$0x3] }
  0x27   :  { %v123_v28 = vmul.f32 %v117_v22, %v111_v27  ;;  %251 = vrsqrt.f32 %v426_v25  ;;  %vm104_vm6 = vcmp.gt.f32.partialorder %v426_v25, 0.0  ;;  %v142_v27 = vld [vmem:[%s582_s1 + $0x1a] sm:$0x3]  ;;  %v145_v25 = vld [vmem:[%s582_s1 + $0x20] sm:$0x3] }
  0x28   :  { %v244_v32 = vpop.eup %243 }
  0x29   :  { %v147_v37 = vmul.f32 %v321_v16, %v123_v28  ;;  %v148_v38 = vmul.f32 %v326_v18, %v123_v28  ;;  %v149_v39 = vmul.f32 %v333_v21, %v123_v28  ;;  %v112_v41 = vsel %vm100_vm2, %v244_v32, 0.0  ;;  %v133_v16 = vld [vmem:[%s582_s1 + $0x8] sm:$0x3]  ;;  %v134_v18 = vld [vmem:[%s582_s1 + $0xa] sm:$0x3] }
  0x2a   :  { %v124_v42 = vmul.f32 %v118_v31, %v112_v41  ;;  %v143_v28 = vld [vmem:[%s582_s1 + $0x1c] sm:$0x3] }
  0x2b   :  { %v246_v46 = vpop.eup %245  ;;  %v165_v48 = vadd.f32 %v147_v37, %v129_v30  ;;  %v166_v49 = vadd.f32 %v148_v38, %v130_v34  ;;  %v167_v50 = vadd.f32 %v149_v39, %v131_v35  ;;  %v146_v38 = vld [vmem:[%s582_s1 + $0x22] sm:$0x3] }
  0x2c   :  { %v150_v21 = vmul.f32 %v337_v23, %v124_v42  ;;  %v151_v52 = vmul.f32 %v342_v26, %v124_v42  ;;  %v152_v53 = vmul.f32 %v347_v29, %v124_v42  ;;  %v113_v54 = vsel %vm101_vm3, %v246_v46, 0.0  ;;  %v135_v23 = vld [vmem:[%s582_s1 + $0xc] sm:$0x3]  ;;  %v120_v26 = vld [vmem:[%s581_s2 + $0x6] sm:$0x3] }
  0x2d   :  { %183 = vst [vmem:[%s583_s3] sm:$0x3] %v165_v48  ;;  %184 = vst [vmem:[%s583_s3 + $0x2] sm:$0x3] %v166_v49  ;;  %v125_v56 = vmul.f32 %v119_v45, %v113_v54 }
  0x2e   :  { %185 = vst [vmem:[%s583_s3 + $0x4] sm:$0x3] %v167_v50  ;;  %v248_v29 = vpop.eup %247  ;;  %v168_v57 = vadd.f32 %v150_v21, %v132_v43  ;;  %v169_v59 = vadd.f32 %v151_v52, %v133_v16  ;;  %v170_v60 = vadd.f32 %v152_v53, %v134_v18 }
  0x2f   :  { %v153_v0 = vmul.f32 %v352_v33, %v125_v56  ;;  %v154_v1 = vmul.f32 %v357_v36, %v125_v56  ;;  %v155_v3 = vmul.f32 %v362_v40, %v125_v56  ;;  %v114_v4 = vsel %vm102_vm4, %v248_v29, 0.0  ;;  %v138_v36 = vld [vmem:[%s582_s1 + $0x12] sm:$0x3]  ;;  %v121_v40 = vld [vmem:[%s581_s2 + $0x8] sm:$0x3] }
  0x30   :  { %186 = vst [vmem:[%s583_s3 + $0x6] sm:$0x3] %v168_v57  ;;  %187 = vst [vmem:[%s583_s3 + $0x8] sm:$0x3] %v169_v59  ;;  %v126_v33 = vmul.f32 %v120_v26, %v114_v4 }
  0x31   :  { %188 = vst [vmem:[%s583_s3 + $0xa] sm:$0x3] %v170_v60  ;;  %v250_v6 = vpop.eup %249  ;;  %v171_v7 = vadd.f32 %v153_v0, %v135_v23  ;;  %v172_v8 = vadd.f32 %v154_v1, %v136_v61  ;;  %v173_v10 = vadd.f32 %v155_v3, %v137_v63 }
  0x32   :  { %v156_v13 = vmul.f32 %v367_v44, %v126_v33  ;;  %v157_v14 = vmul.f32 %v372_v47, %v126_v33  ;;  %v158_v17 = vmul.f32 %v377_v51, %v126_v33  ;;  %v115_v19 = vsel %vm103_vm5, %v250_v6, 0.0  ;;  %v122_v47 = vld [vmem:[%s581_s2 + $0xa] sm:$0x3] }
  0x33   :  { %189 = vst [vmem:[%s583_s3 + $0xc] sm:$0x3] %v171_v7  ;;  %190 = vst [vmem:[%s583_s3 + $0xe] sm:$0x3] %v172_v8  ;;  %v127_v44 = vmul.f32 %v121_v40, %v115_v19 }
  0x34   :  { %191 = vst [vmem:[%s583_s3 + $0x10] sm:$0x3] %v173_v10  ;;  %v252_v51 = vpop.eup %251  ;;  %v174_v15 = vadd.f32 %v156_v13, %v138_v36  ;;  %v175_v20 = vadd.f32 %v157_v14, %v139_v11  ;;  %v176_v22 = vadd.f32 %v158_v17, %v140_v12 }
  0x35   :  { %v159_v30 = vmul.f32 %v382_v55, %v127_v44  ;;  %v160_v31 = vmul.f32 %v387_v58, %v127_v44  ;;  %v161_v32 = vmul.f32 %v392_v62, %v127_v44  ;;  %v116_v34 = vsel %vm104_vm6, %v252_v51, 0.0  ;;  %v144_v62 = vld [vmem:[%s582_s1 + $0x1e] sm:$0x3] }
  0x36   :  { %192 = vst [vmem:[%s583_s3 + $0x12] sm:$0x3] %v174_v15  ;;  %193 = vst [vmem:[%s583_s3 + $0x14] sm:$0x3] %v175_v20  ;;  %v128_v55 = vmul.f32 %v122_v47, %v116_v34 }
  0x37   :  { %194 = vst [vmem:[%s583_s3 + $0x16] sm:$0x3] %v176_v22  ;;  %v177_v35 = vadd.f32 %v159_v30, %v141_v24  ;;  %v178_v58 = vadd.f32 %v160_v31, %v142_v27  ;;  %v179_v37 = vadd.f32 %v161_v32, %v143_v28 }
  0x38   :  { %v162_v39 = vmul.f32 %v397_v2, %v128_v55  ;;  %v163_v41 = vmul.f32 %v402_v5, %v128_v55  ;;  %v164_v42 = vmul.f32 %v409_v9, %v128_v55 }
  0x39   :  { %195 = vst [vmem:[%s583_s3 + $0x18] sm:$0x3] %v177_v35  ;;  %196 = vst [vmem:[%s583_s3 + $0x1a] sm:$0x3] %v178_v58 }
  0x3a   :  { %197 = vst [vmem:[%s583_s3 + $0x1c] sm:$0x3] %v179_v37  ;;  %v180_v43 = vadd.f32 %v162_v39, %v144_v62  ;;  %v181_v45 = vadd.f32 %v163_v41, %v145_v25  ;;  %v182_v46 = vadd.f32 %v164_v42, %v146_v38 }
  0x3c   :  { %198 = vst [vmem:[%s583_s3 + $0x1e] sm:$0x3] %v180_v43  ;;  %199 = vst [vmem:[%s583_s3 + $0x20] sm:$0x3] %v181_v45 }
  0x3d   :  { %200 = vst [vmem:[%s583_s3 + $0x22] sm:$0x3] %v182_v46 }

</bundles_post_ra>
